<compile_context>
chip_gen: v5e
topology: v5e:2x2
jax: 0.10.0
libtpu: 0.0.40
codegen_flags: <defaults>
</compile_context>

<pallas_src>
import functools

import jax
import jax.numpy as jnp
from jax import lax
from jax.experimental import pallas as pl
from jax.experimental.pallas import tpu as pltpu


def fused_mha_kernel(x_ref, wqkv_ref, bqkv_ref, o_ref, *, num_heads, head_dim):
    """One grid step == one batch element; QKV projection + all heads fused.

    x_ref:    (1, T, C)
    wqkv_ref: (C, 3*H*D)   laid out as [q-block | k-block | v-block], each (C, H*D)
    bqkv_ref: (1, 3*H*D)
    o_ref:    (1, T, H*D)  == torch.cat(per-head outputs, dim=2)
    """
    x = x_ref[0]                                                       # (T, C)

    # Single fused projection for all heads and q/k/v (one MXU push, N = 3*H*D).
    qkv = jnp.dot(x, wqkv_ref[...],
                  preferred_element_type=jnp.float32) + bqkv_ref[...]  # (T, 3HD)

    hd = num_heads * head_dim
    scale = head_dim ** (-0.5)
    # Fold the softmax scale into q once: touches (T, H*D) elements instead of
    # H separate (T, T) score matrices.
    q_all = qkv[:, 0 * hd:1 * hd] * scale
    k_all = qkv[:, 1 * hd:2 * hd]
    v_all = qkv[:, 2 * hd:3 * hd]

    outs = []
    # TODO(synk): for long sequence lengths, replace the monolithic (T, T)
    # score matrix with a KV-tiled online-softmax (flash) accumulator so VMEM
    # stays bounded (relevant on v7x's 64 MiB VMEM).
    for h in range(num_heads):                       # unrolled at trace time
        sl = slice(h * head_dim, (h + 1) * head_dim)
        qh, kh, vh = q_all[:, sl], k_all[:, sl], v_all[:, sl]

        # q @ k^T without materializing an explicit transpose of k.
        s = lax.dot_general(qh, kh, (((1,), (1,)), ((), ())),
                            preferred_element_type=jnp.float32)       # (T, T)

        # numerically-stable softmax over the last axis (matches F.softmax(dim=-1))
        s = s - jnp.max(s, axis=-1, keepdims=True)
        p = jnp.exp(s)
        # approx=True would push the divide fully onto the EUP in production;
        # kept exact so the strict 1e-5 reference check holds.
        p = p * pl.reciprocal(jnp.sum(p, axis=-1, keepdims=True), approx=False)

        outs.append(jnp.dot(p, vh, preferred_element_type=jnp.float32))  # (T, D)

    # One dense store of the final (T, H*D) slab, already in the
    # torch.cat(..., dim=2) layout -> wrapper needs no transpose/reshape pass.
    o_ref[0] = jnp.concatenate(outs, axis=-1).astype(o_ref.dtype)


def masked_multi_head_attention(x, wq, wk, wv, bq, bk, bv):
    """x: (B, T, C); wq/wk/wv: (H, C, D); bq/bk/bv: (H, 1, D) -> (B, T, H*D)."""
    B, T, C = x.shape
    H, _, D = wq.shape
    HD = H * D

    # One-time wrapper-side layout prep: fuse q/k/v and all heads so the kernel
    # does a single lane-dense matmul and the weight block is DMA'd to VMEM
    # once (constant block index -> resident across all batch grid steps).
    def flatten_w(w):   # (H, C, D) -> (C, H*D); head h occupies cols [h*D:(h+1)*D]
        return jnp.transpose(w, (1, 0, 2)).reshape(C, HD)

    def flatten_b(b):   # (H, 1, D) -> (H*D,)
        return b.reshape(HD)

    w_qkv = jnp.concatenate([flatten_w(wq), flatten_w(wk), flatten_w(wv)], axis=1)
    b_qkv = jnp.concatenate([flatten_b(bq), flatten_b(bk), flatten_b(bv)])[None, :]

    kernel = functools.partial(fused_mha_kernel, num_heads=H, head_dim=D)

    return pl.pallas_call(
        kernel,
        out_shape=jax.ShapeDtypeStruct((B, T, HD), x.dtype),
        grid_spec=pltpu.PrefetchScalarGridSpec(
            num_scalar_prefetch=0,
            grid=(B,),
            in_specs=[
                pl.BlockSpec((1, T, C), lambda b: (b, 0, 0)),     # x: per-batch tile
                pl.BlockSpec((C, 3 * HD), lambda b: (0, 0)),      # fused QKV weights (resident)
                pl.BlockSpec((1, 3 * HD), lambda b: (0, 0)),      # fused QKV biases  (resident)
            ],
            out_specs=pl.BlockSpec((1, T, HD), lambda b: (b, 0, 0)),
        ),
        compiler_params=pltpu.CompilerParams(
            dimension_semantics=("parallel",)),   # batch steps can split across v7x's 2 TCs
    )(x, w_qkv, b_qkv)


def reference_mha(x, wq, wk, wv, bq, bk, bv):
    """Pure-JAX reference reproducing the PyTorch forward exactly."""
    H, C, D = wq.shape
    outs = []
    for h in range(H):
        q = x @ wq[h] + bq[h]
        k = x @ wk[h] + bk[h]
        v = x @ wv[h] + bv[h]
        s = jnp.einsum("btd,bsd->bts", q, k) * (D ** -0.5)
        p = jax.nn.softmax(s, axis=-1)
        outs.append(jnp.einsum("bts,bsd->btd", p, v))
    return jnp.concatenate(outs, axis=2)


if __name__ == "__main__":
    # small, torch-consistent shapes: d_model divisible by num_heads
    B, T, d_model, num_heads = 2, 8, 32, 4
    dims = d_model // num_heads

    key = jax.random.PRNGKey(0)
    kx, kwq, kwk, kwv, kbq, kbk, kbv = jax.random.split(key, 7)

    x = jax.random.normal(kx, (B, T, d_model), dtype=jnp.float32)

    # deterministic nn.Linear-style init: U(-1/sqrt(in), 1/sqrt(in)),
    # stored as (H, in_features, out_features) = torch weight transposed.
    bound = 1.0 / (d_model ** 0.5)
    wq = jax.random.uniform(kwq, (num_heads, d_model, dims), jnp.float32, -bound, bound)
    wk = jax.random.uniform(kwk, (num_heads, d_model, dims), jnp.float32, -bound, bound)
    wv = jax.random.uniform(kwv, (num_heads, d_model, dims), jnp.float32, -bound, bound)
    bq = jax.random.uniform(kbq, (num_heads, 1, dims), jnp.float32, -bound, bound)
    bk = jax.random.uniform(kbk, (num_heads, 1, dims), jnp.float32, -bound, bound)
    bv = jax.random.uniform(kbv, (num_heads, 1, dims), jnp.float32, -bound, bound)

    out = masked_multi_head_attention(x, wq, wk, wv, bq, bk, bv)
    out = jax.block_until_ready(out)

    ref = reference_mha(x, wq, wk, wv, bq, bk, bv)
    assert out.shape == (B, T, d_model), out.shape
    assert jnp.allclose(out, ref, rtol=1e-5, atol=1e-5), \
        float(jnp.max(jnp.abs(out - ref)))

    print("KERNEL_OK")
</pallas_src>

<mosaic_0001>
module attributes {stable_mosaic.version = 11 : i64} {
  func.func @fused_mha_kernel(%arg0: i32, %arg1: memref<1x8x32xf32, #tpu.memory_space<vmem>>, %arg2: memref<32x96xf32, #tpu.memory_space<vmem>>, %arg3: memref<1x96xf32, #tpu.memory_space<vmem>>, %arg4: memref<1x8x32xf32, #tpu.memory_space<vmem>>) attributes {dimension_semantics = [#tpu.dimension_semantics<parallel>], iteration_bounds = array<i64: 2>, scalar_prefetch = 0 : i64, scratch_operands = 0 : i64, tpu.core_type = #tpu.core_type<tc>, window_params = [{transform_indices = @transform_0, window_bounds = array<i64: 1, 8, 32>}, {pipeline_mode = #tpu.pipeline_mode<synchronous>, transform_indices = @transform_1, window_bounds = array<i64: 32, 96>}, {pipeline_mode = #tpu.pipeline_mode<synchronous>, transform_indices = @transform_2, window_bounds = array<i64: 1, 96>}, {transform_indices = @transform_3, window_bounds = array<i64: 1, 8, 32>}]} {
    %c0 = arith.constant 0 : index
    %c0_0 = arith.constant 0 : index
    %c0_1 = arith.constant 0 : index
    %0 = vector.load %arg1[%c0, %c0_0, %c0_1] : memref<1x8x32xf32, #tpu.memory_space<vmem>>, vector<1x8x32xf32>
    %1 = vector.shape_cast %0 : vector<1x8x32xf32> to vector<8x32xf32>
    %c0_2 = arith.constant 0 : index
    %c0_3 = arith.constant 0 : index
    %2 = vector.load %arg2[%c0_2, %c0_3] : memref<32x96xf32, #tpu.memory_space<vmem>>, vector<32x96xf32>
    %cst = arith.constant dense<0.000000e+00> : vector<8x96xf32>
    %3 = tpu.matmul %1, %2, %cst {dimension_numbers = #tpu.dot_dimension_numbers<[1], [0], [0], [1], [0, 0, 1, 1], [], []>} : vector<8x32xf32>, vector<32x96xf32>, vector<8x96xf32> -> vector<8x96xf32>
    %c0_4 = arith.constant 0 : index
    %c0_5 = arith.constant 0 : index
    %4 = vector.load %arg3[%c0_4, %c0_5] : memref<1x96xf32, #tpu.memory_space<vmem>>, vector<1x96xf32>
    %5 = vector.broadcast %4 : vector<1x96xf32> to vector<8x96xf32>
    %6 = arith.addf %3, %5 : vector<8x96xf32>
    %7 = vector.extract_strided_slice %6 {offsets = [0, 0], sizes = [8, 32], strides = [1, 1]} : vector<8x96xf32> to vector<8x32xf32>
    %cst_6 = arith.constant 0.353553385 : f32
    %8 = vector.broadcast %cst_6 : f32 to vector<8x32xf32>
    %9 = arith.mulf %7, %8 : vector<8x32xf32>
    %10 = vector.extract_strided_slice %6 {offsets = [0, 32], sizes = [8, 32], strides = [1, 1]} : vector<8x96xf32> to vector<8x32xf32>
    %11 = vector.extract_strided_slice %6 {offsets = [0, 64], sizes = [8, 32], strides = [1, 1]} : vector<8x96xf32> to vector<8x32xf32>
    %12 = vector.extract_strided_slice %9 {offsets = [0, 0], sizes = [8, 8], strides = [1, 1]} : vector<8x32xf32> to vector<8x8xf32>
    %13 = vector.extract_strided_slice %10 {offsets = [0, 0], sizes = [8, 8], strides = [1, 1]} : vector<8x32xf32> to vector<8x8xf32>
    %14 = vector.extract_strided_slice %11 {offsets = [0, 0], sizes = [8, 8], strides = [1, 1]} : vector<8x32xf32> to vector<8x8xf32>
    %cst_7 = arith.constant dense<0.000000e+00> : vector<8x8xf32>
    %15 = tpu.matmul %12, %13, %cst_7 {dimension_numbers = #tpu.dot_dimension_numbers<[1], [1], [0], [0], [0, 0, 1, 0], [], []>} : vector<8x8xf32>, vector<8x8xf32>, vector<8x8xf32> -> vector<8x8xf32>
    %cst_8 = arith.constant dense<0xFF800000> : vector<8xf32>
    %16 = vector.multi_reduction <maximumf>, %15, %cst_8 [1] : vector<8x8xf32> to vector<8xf32>
    %17 = vector.shape_cast %16 : vector<8xf32> to vector<8x1xf32>
    %18 = vector.broadcast %17 : vector<8x1xf32> to vector<8x8xf32>
    %19 = arith.subf %15, %18 : vector<8x8xf32>
    %20 = math.exp %19 : vector<8x8xf32>
    %cst_9 = arith.constant dense<0.000000e+00> : vector<8xf32>
    %21 = vector.multi_reduction <add>, %20, %cst_9 [1] : vector<8x8xf32> to vector<8xf32>
    %22 = vector.shape_cast %21 : vector<8xf32> to vector<8x1xf32>
    %23 = tpu.reciprocal %22 : vector<8x1xf32> -> vector<8x1xf32>
    %24 = vector.broadcast %23 : vector<8x1xf32> to vector<8x8xf32>
    %25 = arith.mulf %20, %24 : vector<8x8xf32>
    %cst_10 = arith.constant dense<0.000000e+00> : vector<8x8xf32>
    %26 = tpu.matmul %25, %14, %cst_10 {dimension_numbers = #tpu.dot_dimension_numbers<[1], [0], [0], [1], [0, 0, 1, 1], [], []>} : vector<8x8xf32>, vector<8x8xf32>, vector<8x8xf32> -> vector<8x8xf32>
    %27 = vector.extract_strided_slice %9 {offsets = [0, 8], sizes = [8, 8], strides = [1, 1]} : vector<8x32xf32> to vector<8x8xf32>
    %28 = vector.extract_strided_slice %10 {offsets = [0, 8], sizes = [8, 8], strides = [1, 1]} : vector<8x32xf32> to vector<8x8xf32>
    %29 = vector.extract_strided_slice %11 {offsets = [0, 8], sizes = [8, 8], strides = [1, 1]} : vector<8x32xf32> to vector<8x8xf32>
    %cst_11 = arith.constant dense<0.000000e+00> : vector<8x8xf32>
    %30 = tpu.matmul %27, %28, %cst_11 {dimension_numbers = #tpu.dot_dimension_numbers<[1], [1], [0], [0], [0, 0, 1, 0], [], []>} : vector<8x8xf32>, vector<8x8xf32>, vector<8x8xf32> -> vector<8x8xf32>
    %cst_12 = arith.constant dense<0xFF800000> : vector<8xf32>
    %31 = vector.multi_reduction <maximumf>, %30, %cst_12 [1] : vector<8x8xf32> to vector<8xf32>
    %32 = vector.shape_cast %31 : vector<8xf32> to vector<8x1xf32>
    %33 = vector.broadcast %32 : vector<8x1xf32> to vector<8x8xf32>
    %34 = arith.subf %30, %33 : vector<8x8xf32>
    %35 = math.exp %34 : vector<8x8xf32>
    %cst_13 = arith.constant dense<0.000000e+00> : vector<8xf32>
    %36 = vector.multi_reduction <add>, %35, %cst_13 [1] : vector<8x8xf32> to vector<8xf32>
    %37 = vector.shape_cast %36 : vector<8xf32> to vector<8x1xf32>
    %38 = tpu.reciprocal %37 : vector<8x1xf32> -> vector<8x1xf32>
    %39 = vector.broadcast %38 : vector<8x1xf32> to vector<8x8xf32>
    %40 = arith.mulf %35, %39 : vector<8x8xf32>
    %cst_14 = arith.constant dense<0.000000e+00> : vector<8x8xf32>
    %41 = tpu.matmul %40, %29, %cst_14 {dimension_numbers = #tpu.dot_dimension_numbers<[1], [0], [0], [1], [0, 0, 1, 1], [], []>} : vector<8x8xf32>, vector<8x8xf32>, vector<8x8xf32> -> vector<8x8xf32>
    %42 = vector.extract_strided_slice %9 {offsets = [0, 16], sizes = [8, 8], strides = [1, 1]} : vector<8x32xf32> to vector<8x8xf32>
    %43 = vector.extract_strided_slice %10 {offsets = [0, 16], sizes = [8, 8], strides = [1, 1]} : vector<8x32xf32> to vector<8x8xf32>
    %44 = vector.extract_strided_slice %11 {offsets = [0, 16], sizes = [8, 8], strides = [1, 1]} : vector<8x32xf32> to vector<8x8xf32>
    %cst_15 = arith.constant dense<0.000000e+00> : vector<8x8xf32>
    %45 = tpu.matmul %42, %43, %cst_15 {dimension_numbers = #tpu.dot_dimension_numbers<[1], [1], [0], [0], [0, 0, 1, 0], [], []>} : vector<8x8xf32>, vector<8x8xf32>, vector<8x8xf32> -> vector<8x8xf32>
    %cst_16 = arith.constant dense<0xFF800000> : vector<8xf32>
    %46 = vector.multi_reduction <maximumf>, %45, %cst_16 [1] : vector<8x8xf32> to vector<8xf32>
    %47 = vector.shape_cast %46 : vector<8xf32> to vector<8x1xf32>
    %48 = vector.broadcast %47 : vector<8x1xf32> to vector<8x8xf32>
    %49 = arith.subf %45, %48 : vector<8x8xf32>
    %50 = math.exp %49 : vector<8x8xf32>
    %cst_17 = arith.constant dense<0.000000e+00> : vector<8xf32>
    %51 = vector.multi_reduction <add>, %50, %cst_17 [1] : vector<8x8xf32> to vector<8xf32>
    %52 = vector.shape_cast %51 : vector<8xf32> to vector<8x1xf32>
    %53 = tpu.reciprocal %52 : vector<8x1xf32> -> vector<8x1xf32>
    %54 = vector.broadcast %53 : vector<8x1xf32> to vector<8x8xf32>
    %55 = arith.mulf %50, %54 : vector<8x8xf32>
    %cst_18 = arith.constant dense<0.000000e+00> : vector<8x8xf32>
    %56 = tpu.matmul %55, %44, %cst_18 {dimension_numbers = #tpu.dot_dimension_numbers<[1], [0], [0], [1], [0, 0, 1, 1], [], []>} : vector<8x8xf32>, vector<8x8xf32>, vector<8x8xf32> -> vector<8x8xf32>
    %57 = vector.extract_strided_slice %9 {offsets = [0, 24], sizes = [8, 8], strides = [1, 1]} : vector<8x32xf32> to vector<8x8xf32>
    %58 = vector.extract_strided_slice %10 {offsets = [0, 24], sizes = [8, 8], strides = [1, 1]} : vector<8x32xf32> to vector<8x8xf32>
    %59 = vector.extract_strided_slice %11 {offsets = [0, 24], sizes = [8, 8], strides = [1, 1]} : vector<8x32xf32> to vector<8x8xf32>
    %cst_19 = arith.constant dense<0.000000e+00> : vector<8x8xf32>
    %60 = tpu.matmul %57, %58, %cst_19 {dimension_numbers = #tpu.dot_dimension_numbers<[1], [1], [0], [0], [0, 0, 1, 0], [], []>} : vector<8x8xf32>, vector<8x8xf32>, vector<8x8xf32> -> vector<8x8xf32>
    %cst_20 = arith.constant dense<0xFF800000> : vector<8xf32>
    %61 = vector.multi_reduction <maximumf>, %60, %cst_20 [1] : vector<8x8xf32> to vector<8xf32>
    %62 = vector.shape_cast %61 : vector<8xf32> to vector<8x1xf32>
    %63 = vector.broadcast %62 : vector<8x1xf32> to vector<8x8xf32>
    %64 = arith.subf %60, %63 : vector<8x8xf32>
    %65 = math.exp %64 : vector<8x8xf32>
    %cst_21 = arith.constant dense<0.000000e+00> : vector<8xf32>
    %66 = vector.multi_reduction <add>, %65, %cst_21 [1] : vector<8x8xf32> to vector<8xf32>
    %67 = vector.shape_cast %66 : vector<8xf32> to vector<8x1xf32>
    %68 = tpu.reciprocal %67 : vector<8x1xf32> -> vector<8x1xf32>
    %69 = vector.broadcast %68 : vector<8x1xf32> to vector<8x8xf32>
    %70 = arith.mulf %65, %69 : vector<8x8xf32>
    %cst_22 = arith.constant dense<0.000000e+00> : vector<8x8xf32>
    %71 = tpu.matmul %70, %59, %cst_22 {dimension_numbers = #tpu.dot_dimension_numbers<[1], [0], [0], [1], [0, 0, 1, 1], [], []>} : vector<8x8xf32>, vector<8x8xf32>, vector<8x8xf32> -> vector<8x8xf32>
    %72 = tpu.concatenate %26, %41, %56, %71 in 1 : vector<8x8xf32>, vector<8x8xf32>, vector<8x8xf32>, vector<8x8xf32> -> vector<8x32xf32>
    %c0_23 = arith.constant 0 : index
    %c0_24 = arith.constant 0 : index
    %c0_25 = arith.constant 0 : index
    %73 = vector.load %arg4[%c0_23, %c0_24, %c0_25] : memref<1x8x32xf32, #tpu.memory_space<vmem>>, vector<1x8x32xf32>
    %74 = vector.shape_cast %73 : vector<1x8x32xf32> to vector<8x32xf32>
    %75 = vector.shape_cast %72 : vector<8x32xf32> to vector<1x8x32xf32>
    tpu.vector_store %arg4[%c0_23, %c0_24, %c0_25], %75 {strides = array<i32>} : memref<1x8x32xf32, #tpu.memory_space<vmem>>, vector<1x8x32xf32>,
    return
  }
  func.func @transform_0(%arg0: i32) -> (i32, i32, i32) {
    %c0_i32 = arith.constant 0 : i32
    %c0_i32_0 = arith.constant 0 : i32
    %c0_i32_1 = arith.constant 0 : i32
    return %arg0, %c0_i32, %c0_i32_0 : i32, i32, i32
  }
  func.func @transform_1(%arg0: i32) -> (i32, i32) {
    %c0_i32 = arith.constant 0 : i32
    %c0_i32_0 = arith.constant 0 : i32
    %c0_i32_1 = arith.constant 0 : i32
    return %c0_i32, %c0_i32_0 : i32, i32
  }
  func.func @transform_2(%arg0: i32) -> (i32, i32) {
    %c0_i32 = arith.constant 0 : i32
    %c0_i32_0 = arith.constant 0 : i32
    %c0_i32_1 = arith.constant 0 : i32
    return %c0_i32, %c0_i32_0 : i32, i32
  }
  func.func @transform_3(%arg0: i32) -> (i32, i32, i32) {
    %c0_i32 = arith.constant 0 : i32
    %c0_i32_0 = arith.constant 0 : i32
    %c0_i32_1 = arith.constant 0 : i32
    return %arg0, %c0_i32, %c0_i32_0 : i32, i32, i32
  }
}

</mosaic_0001>

<bundles_post_ra>
// kernel: tpu_custom_call.1
= control target key start
LH: loop header
LB: loop body
LE: loop exit
PB: predicated region body
PF: predicated region fallthrough
CT: control target
= control target key end

     0   :  { %8 = vsyncpa [#allocation3], 0  ;;  %s1148_s0 = inlined_call_operand.hbm [shape: f32[2,8,32], index: 0, kind: input, shape index: {}]   ;;  %s1149_s1 = inlined_call_operand.hbm [shape: f32[32,96], index: 1, kind: input, shape index: {}]   ;;  %s1150_s2 = inlined_call_operand.vmem [shape: f32[1,96], index: 2, kind: input, shape index: {}]   ;;  %s1151_s3 = inlined_call_operand.hbm [shape: f32[2,8,32], index: 3, kind: output, shape index: {}]  }
   0x1   :  { %10 = vsyncpa [#allocation3 + $0x1], 0 }
   0x2   :  { %11 = vsyncpa [#allocation6], 0 }
   0x3   :  { %12 = vsyncpa [#allocation4], 0 }
   0x4   :  { %14 = vsyncpa [#allocation4 + $0x1], 0  ;;  %s952_s12 = smov 0   ;;  %s954_s13 = smov 0  }
   0x5   :  { %s956_s14 = smov 0   ;;  %s958_s15 = smov 0  }
   0x6 LB: > { %s130_s18 = sshll.u32 %s1149_s1, 4  ;;  %s976_s19 = sadd.s32 4294967295, %s913_s15   ;;  %s913_s15 = sphi %s958_s15, %s1161_s15   ;;  %s909_s14 = sphi %s956_s14, %s1160_s14   ;;  %s905_s13 = sphi %s954_s13, %s1159_s13   ;;  %s901_s12 = sphi %s952_s12, %s1158_s12   ;;  %s131_s18 = int_to_ptr.hbm [resolvable:$true] %s130_s18 }
   0x7   : > { %p667_p0 = scmp.ge.s32.totalorder %s913_s15, 1  ;;  %p41_p1 = scmp.eq.s32.totalorder %s976_s19, 0 }
   0x8   : > { %p119_p2 = scmp.lt.s32.totalorder %s913_s15, 3  ;;  %s915_s21 = smov [#allocation5]  }
   0x9   : > { %s132_s22 = sshll.u32 %s915_s21, 4  ;;  %s916_s23 = smov 128   ;;  %s133_s22 = int_to_ptr.vmem [resolvable:$true] %s132_s22 }
   0xa   : > { %p981_p3 = pnand %p667_p0, %p119_p2  ;;  %s917_s24 = smov 8  }
   0xb   : > { %s666_s25 = sadd.s32 4294967294, %s913_s15   ;;  %s992_s26 = sadd.s32 1, %s913_s15  }
   0xc   : > { %p701_p4 = pneg %p981_p3  ;;  %s27_s27 = sadd.s32 1, %s909_s14 }
   0xd   : > { %s24_s28 = ssub.s32 %s913_s15, %s992_s26  ;;  %p34_p7 = scmp.ne.s32.totalorder %s909_s14, %s905_s13 }
   0xe   : > { %p702_p6 = pnand %p701_p4, %p41_p1  ;;  %p25_p8 = scmp.eq.s32.totalorder %s24_s28, 0 }
   0xf   : > { %p35_p9 = scmp.eq.s32.totalorder %s913_s15, 0  ;;  %p40_p10 = scmp.ne.s32.totalorder %s905_s13, %s901_s12 }
  0x10   : > { %704 = dma.hbm_to_vmem [thread:$0]  (!%p702_p6), %s131_s18, 512, %s133_s22, [#allocation6], %s916_s23, %s916_s23, %s917_s24  }
  0x11   : > { %p106_p11 = scmp.eq.s32.totalorder %s976_s19, 1  ;;  %p1008_p12 = por %p41_p1, %p40_p10 }
  0x12   : > { %s1004_s29 = scalar_select %p25_p8, %s909_s14, %s27_s27  }
  0x13   : > { %p1012_p13 = por %p106_p11, %p34_p7  ;;  %p112_p0 = scmp.eq.s32.totalorder %s666_s25, 1 }
  0x14   : > { %p36_p2 = por %p35_p9, %p34_p7  ;;  %s149_s5 = sand.u32 1, %s909_s14  }
  0x15   : > { %p1017_p4 = por %p112_p0, %p40_p10  ;;  %p714_p6 = scmp.lt.s32.totalorder %s913_s15, 2 }
  0x16   : > { %s670_s7 = sshll.u32 %s149_s5, 3  ;;  %s671_s8 = sshll.u32 %s913_s15, 3 }
  0x17   : > { %s157_s11 = scalar_lea.hbm %s1148_s0, %s671_s8  ;;  %s153_s17 = scalar_lea.vmem [#allocation2], %s670_s7 }
  0x18   : > { %s159_s16 = sshll.u32 %s157_s11, 4  ;;  %s161_s18 = sshll.u32 %s153_s17, 4  ;;  %s160_s16 = int_to_ptr.hbm [resolvable:$true] %s159_s16  ;;  %s162_s18 = int_to_ptr.vmem [resolvable:$true] %s161_s18 }
  0x19   : > { %p1026_p8 = pnand %p714_p6, %p36_p2  ;;  %s150_s22 = scalar_lea.sflag [#allocation3], %s149_s5 }
  0x1a   : > { %s813_s23 = sshra.s32 %s160_s16, 4  ;;  %s820_s28 = scalar_lea.hbm %s1148_s0, 16  ;;  %s814_s23 = int_to_ptr.hbm [resolvable:$true] %s813_s23 }
  0x1b   : > { %s815_s24 = scalar_lea.hbm %s814_s23, 8  ;;  %p817_p9 = pneg %p1026_p8 }
  0x1c   : > { %p816_p7 = scmp.ne.s32.totalorder %s814_s23, %s815_s24  ;;  %p821_p0 = scmp.lt.s32.totalorder %s814_s23, %s1148_s0 }
  0x1d   : > { %p822_p2 = scmp.lt.s32.totalorder %s820_s28, %s815_s24 }
  0x1e   : > { %p818_p10 = pnand %p817_p9, %p816_p7 }
  0x1f   : > { %p823_p6 = por %p822_p2, %p821_p0 }
  0x20   : > { %p819_p11 = pneg %p818_p10 }
  0x22   : > { %p824_p5 = pnand %p823_p6, %p819_p11 }
  0x24   : > { %827 = shalt.err (!%p824_p5)
}
  0x25   : > { %708 = dma.hbm_to_vmem [thread:$0]  (!%p1026_p8), %s160_s16, 128, %s162_s18, %s150_s22  }
  0x26   : > { %170 = sbr.rel (%p981_p3) target bundleno = 970 (0x3ca), region = 32  ;;  %s1043_s5 = sand.u32 (!%p981_p3), 1, %s905_s13  }
  0x27   : > { %s673_s9 = sshll.u32 (!%p981_p3), %s1043_s5, 3  ;;  %s173_s10 = scalar_lea.sflag (!%p981_p3), [#allocation3], %s1043_s5 }
  0x28   : > { %s176_s11 = scalar_lea.vmem (!%p981_p3), [#allocation2], %s673_s9 }
  0x2b   : > { %888 = dma.done.wait (%p1008_p12), %s173_s10, 128  }
  0x2c   : > { %890 = vsyncadd (%p1008_p12), %s173_s10, 4294967168 }
  0x2d   : > { %892 = dma.done.wait (%p41_p1), [#allocation6], 512  }
  0x2e   : > { %894 = vsyncadd (%p41_p1), [#allocation6], 4294966784  ;;  %v209_v0 = vld [vmem:[#allocation5 + $0x18] sm:$0xff]  ;;  %v208_v1 = vld [vmem:[#allocation5 + $0x10] sm:$0xff]  ;;  %vm214_vm0 = vcmask 261120   ;;  %s918_s16 = smov 72  }
  0x2f   : > { %230 = vmatpush.msra.mxu0 %v209_v0  ;;  %v207_v2 = vld [vmem:[#allocation5 + $0x8] sm:$0xff]  ;;  %v206_v3 = vld [vmem:[#allocation5] sm:$0xff]  ;;  %v205_v4 = vld [vmem:[%s176_s11] sm:$0xff]  ;;  %s919_s17 = smov 96   ;;  %s920_s18 = smov 120   ;;  %vm242_vm1 = vcmask 64512  }
  0x30   : > { %v766_v5 = vld [vmem:[%s1150_s2] ss:$0 sm:$0xff]  ;;  %s921_s21 = smov 88   ;;  %s922_s22 = smov 112  }
  0x31   : > { %231 = vmatpush.msra.mxu0 %v208_v1  ;;  %s923_s23 = smov 80   ;;  %s924_s24 = smov 104  }
  0x32   : > { %s925_s25 = smov 56   ;;  %s926_s27 = smov 40  }
  0x33   : > { %232 = vmatpush.msra.mxu0 %v207_v2  ;;  %s927_s28 = smov 64   ;;  %s928_s7 = smov 48  }
  0x34   : > { %s929_s8 = smov 8   ;;  %s930_s10 = smov 24  }
  0x35   : > { %233 = vmatpush.msra.mxu0 %v206_v3  ;;  %s931_s11 = smov 16   ;;  %s690_s20 = sshll.u32 %s976_s19, 3 }
  0x36   : > { %676 = vmatmul.msk.f32.vlgmr.msra.gmra.mxu0 %vm214_vm0, %v205_v4  ;;  %s571_s19 = scalar_lea.sflag [#allocation4], %s1043_s5 }
  0xb3   : > { %v235_v6 = vpop.f32.mrf.mxu0 }
  0xb4   : > { %v1061_v7 = vadd.f32 %v766_v5, %v235_v6 }
  0xb6   : > { %476 = vrot.lane.b32.xlu2 %v1061_v7, %s918_s16  ;;  %240 = vrot.lane.b32.xlu0 %v1061_v7, %s919_s17  ;;  %v238_v8 = vmul.f32 0.35355338, %v1061_v7  ;;  %s581_s17 = scalar_lea.hbm %s1151_s3, %s690_s20 }
  0xb8   : > { %318 = vrot.lane.b32.xlu1 %v238_v8, %s920_s18  ;;  %s204_s18 = scalar_lea.vmem [#allocation7], %s673_s9 }
  0xbe   : > { %320 = vrot.lane.b32.xlu0 %v1061_v7, %s921_s21  ;;  %396 = vrot.lane.b32.xlu2 %v238_v8, %s922_s22  ;;  %s583_s21 = sshll.u32 %s204_s18, 4  ;;  %s585_s22 = sshll.u32 %s581_s17, 4  ;;  %s584_s21 = int_to_ptr.vmem [resolvable:$true] %s583_s21  ;;  %s586_s22 = int_to_ptr.hbm [resolvable:$true] %s585_s22 }
  0xc0   : > { %398 = vrot.lane.b32.xlu1 %v1061_v7, %s923_s23  ;;  %s857_s23 = sshra.s32 %s586_s22, 4  ;;  %s858_s23 = int_to_ptr.hbm [resolvable:$true] %s857_s23 }
  0xc1   : > { %p864_p12 = scmp.lt.s32.totalorder %s858_s23, %s1151_s3 }
  0xc6   : > { %474 = vrot.lane.b32.xlu0 %v238_v8, %s924_s24  ;;  %s859_s24 = scalar_lea.hbm %s858_s23, 8 }
  0xc7   : > { %p860_p1 = scmp.ne.s32.totalorder %s858_s23, %s859_s24 }
  0xc9   : > { %p861_p3 = pnand %p860_p1, %p1012_p13 }
  0xcb   : > { %p862_p5 = pneg %p861_p3 }
 0x110   : > { %v477_v9 = vpop.permute.xlu2 %476 }
 0x111   : > { %686 = vmatpush.xpose.msk.msrb.mxu0 %vm242_vm1, %v477_v9 }
 0x118   : > { %v397_v14 = vpop.permute.xlu2 %396 }
 0x128   : > { %v241_v10 = vpop.permute.xlu0 %240 }
 0x129   : > { %677 = vmatpush.xpose.msk.msra.mxu1 %vm242_vm1, %v241_v10 }
 0x12a   : > { %v319_v11 = vpop.permute.xlu1 %318 }
 0x12c   : > { %678 = vmatmul.msk.f32.vlgmr.msra.gmra.mxu1 %vm242_vm1, %v238_v8 }
 0x130   : > { %v321_v12 = vpop.permute.xlu0 %320 }
 0x131   : > { %680 = vmatpush.xpose.msk.msra.mxu3 %vm242_vm1, %v321_v12 }
 0x132   : > { %v399_v13 = vpop.permute.xlu1 %398 }
 0x133   : > { %683 = vmatpush.xpose.msk.msrb.mxu1 %vm242_vm1, %v399_v13 }
 0x134   : > { %681 = vmatmul.msk.f32.vlgmr.msra.gmra.mxu3 %vm242_vm1, %v319_v11 }
 0x136   : > { %684 = vmatmul.msk.f32.vlgmr.msrb.gmra.mxu1 %vm242_vm1, %v397_v14 }
 0x138   : > { %v475_v15 = vpop.permute.xlu0 %474 }
 0x139   : > { %687 = vmatmul.msk.f32.vlgmr.msrb.gmra.mxu0 %vm242_vm1, %v475_v15 }
 0x1a9   : > { %v265_v16 = vpop.f32.mrf.mxu1 }
 0x1aa   : > { %v268_v17 = vsel %vm242_vm1, %v265_v16, -inf }
 0x1ab   : > { %269 = vmax.xlane.f32.xlu1 %v268_v17 }
 0x1b3   : > { %v421_v18 = vpop.f32.mrf.mxu1 }
 0x1b4   : > { %v424_v19 = vsel %vm242_vm1, %v421_v18, -inf }
 0x1b5   : > { %425 = vmax.xlane.f32.xlu0 %v424_v19 }
 0x1b6   : > { %v499_v22 = vpop.f32.mrf.mxu0 }
 0x1b7   : > { %v343_v20 = vpop.f32.mrf.mxu3  ;;  %v502_v23 = vsel %vm242_vm1, %v499_v22, -inf }
 0x1b8   : > { %v346_v21 = vsel %vm242_vm1, %v343_v20, -inf }
 0x1b9   : > { %347 = vmax.xlane.f32.xlu2 %v346_v21 }
 0x1c1   : > { %503 = vmax.xlane.f32.xlu2 %v502_v23 }
 0x1c9   : > { %370 = vrot.lane.b32.xlu0 %v1061_v7, %s925_s25 }
 0x21e   : > { %v270_v24 = vpop.xlane.xlu1 %269 }
 0x21f   : > { %v271_v25 = vsub.f32 %v265_v16, %v270_v24 }
 0x221   : > { %v272_v26 = vmul.f32 1.442695, %v271_v25 }
 0x223   : > { %767 = vpow2.f32 %v272_v26 }
 0x228   : > { %v426_v27 = vpop.xlane.xlu0 %425 }
 0x229   : > { %v768_v28 = vpop.eup %767  ;;  %v427_v29 = vsub.f32 %v421_v18, %v426_v27 }
 0x22a   : > { %v274_v30 = vsel %vm242_vm1, %v768_v28, 0.0 }
 0x22b   : > { %v428_v31 = vmul.f32 1.442695, %v427_v29  ;;  %275 = vadd.xlane.f32.xlu1 %v274_v30 }
 0x22c   : > { %v348_v32 = vpop.xlane.xlu2 %347 }
 0x22d   : > { %769 = vpow2.f32 %v428_v31  ;;  %v349_v33 = vsub.f32 %v343_v20, %v348_v32 }
 0x22f   : > { %v350_v34 = vmul.f32 1.442695, %v349_v33 }
 0x231   : > { %771 = vpow2.f32 %v350_v34 }
 0x233   : > { %v1082_v35 = vpop.eup %769 }
 0x234   : > { %v504_v36 = vpop.xlane.xlu2 %503  ;;  %v430_v37 = vsel %vm242_vm1, %v1082_v35, 0.0 }
 0x235   : > { %v505_v38 = vsub.f32 %v499_v22, %v504_v36  ;;  %431 = vadd.xlane.f32.xlu0 %v430_v37 }
 0x237   : > { %v1086_v39 = vpop.eup %771  ;;  %v506_v40 = vmul.f32 1.442695, %v505_v38 }
 0x238   : > { %v352_v41 = vsel %vm242_vm1, %v1086_v39, 0.0 }
 0x239   : > { %773 = vpow2.f32 %v506_v40  ;;  %353 = vadd.xlane.f32.xlu2 %v352_v41 }
 0x23b   : > { %v371_v45 = vpop.permute.xlu0 %370 }
 0x23f   : > { %v1090_v42 = vpop.eup %773 }
 0x240   : > { %v508_v43 = vsel %vm242_vm1, %v1090_v42, 0.0 }
 0x241   : > { %509 = vadd.xlane.f32.xlu1 %v508_v43 }
 0x249   : > { %526 = vrot.lane.b32.xlu0 %v1061_v7, %s926_s27  ;;  %s863_s27 = scalar_lea.hbm %s1151_s3, 16 }
 0x24a   : > { %p865_p8 = scmp.lt.s32.totalorder %s863_s27, %s859_s24 }
 0x24c   : > { %p866_p7 = por %p865_p8, %p864_p12 }
 0x24e   : > { %p867_p9 = pnand %p866_p7, %p862_p5 }
 0x251   : > { %292 = vrot.lane.b32.xlu2 %v1061_v7, %s927_s28 }
 0x25a   : > { %448 = vrot.lane.b32.xlu1 %v1061_v7, %s928_s7 }
 0x29e   : > { %v276_v44 = vpop.xlane.xlu1 %275 }
 0x29f   : > { %775 = vrcp.f32 %v276_v44  ;;  %v288_v51 = vand.u32 2147483648, %v276_v44  ;;  %vm282_vm3 = vweird.f32 %v276_v44  ;;  %v286_v54 = vand.u32 2147483647, %v276_v44 }
 0x2a1   : > { %v289_v56 = vor.u32 1.1754944e-38, %v288_v51  ;;  %vm287_vm5 = vcmp.eq.f32.partialorder %v286_v54, 8.507059e+37 }
 0x2a5   : > { %v776_v46 = vpop.eup %775 }
 0x2a6   : > { %v278_v47 = vmul.f32 %v776_v46, %v276_v44  ;;  %vm283_vm2 = vweird.f32 %v776_v46 }
 0x2a7   : > { %vm284_vm4 = vmor %vm282_vm3, %vm283_vm2 }
 0x2a8   : > { %v279_v48 = vsub.f32 1.0, %v278_v47  ;;  %v1097_v49 = vpop.xlane.xlu0 %431 }
 0x2a9   : > { %777 = vrcp.f32 %v1097_v49  ;;  %v444_v21 = vand.u32 2147483648, %v1097_v49  ;;  %vm438_vm14 = vweird.f32 %v1097_v49  ;;  %v442_v23 = vand.u32 2147483647, %v1097_v49 }
 0x2aa   : > { %v280_v50 = vmul.f32 %v776_v46, %v279_v48 }
 0x2ab   : > { %vm443_vm3 = vcmp.eq.f32.partialorder %v442_v23, 8.507059e+37 }
 0x2ac   : > { %v354_v52 = vpop.xlane.xlu2 %353  ;;  %v281_v53 = vadd.f32 %v776_v46, %v280_v50 }
 0x2ad   : > { %779 = vrcp.f32 %v354_v52  ;;  %v366_v2 = vand.u32 2147483648, %v354_v52  ;;  %v364_v4 = vand.u32 2147483647, %v354_v52  ;;  %vm360_vm7 = vweird.f32 %v354_v52 }
 0x2ae   : > { %v285_v55 = vsel %vm284_vm4, %v776_v46, %v281_v53  ;;  %vm565_vm4 = vcmask 130048  }
 0x2af   : > { %v290_v57 = vsel %vm287_vm5, %v289_v56, %v285_v55  ;;  %v778_v58 = vpop.eup %777  ;;  %v367_v8 = vor.u32 1.1754944e-38, %v366_v2  ;;  %vm365_vm9 = vcmp.eq.f32.partialorder %v364_v4, 8.507059e+37  ;;  %vm567_vm5 = vcmask 195584  }
 0x2b0   : > { %v291_v63 = vmul.f32 %v768_v28, %v290_v57  ;;  %v434_v0 = vmul.f32 %v778_v58, %v1097_v49  ;;  %vm439_vm11 = vweird.f32 %v778_v58  ;;  %v445_v28 = vor.u32 1.1754944e-38, %v444_v21 }
 0x2b1   : > { %vm440_vm2 = vmor %vm438_vm14, %vm439_vm11 }
 0x2b2   : > { %v435_v5 = vsub.f32 1.0, %v434_v0 }
 0x2b3   : > { %v780_v59 = vpop.eup %779 }
 0x2b4   : > { %v356_v60 = vmul.f32 %v780_v59, %v354_v52  ;;  %v293_v61 = vpop.permute.xlu2 %292  ;;  %v510_v62 = vpop.xlane.xlu1 %509  ;;  %vm361_vm6 = vweird.f32 %v780_v59  ;;  %v436_v13 = vmul.f32 %v778_v58, %v435_v5 }
 0x2b5   : > { %781 = vrcp.f32 %v510_v62  ;;  %313 = vmatpush.msra.mxu2 %v293_v61  ;;  %vm362_vm8 = vmor %vm360_vm7, %vm361_vm6  ;;  %v522_v16 = vand.u32 2147483648, %v510_v62  ;;  %v520_v18 = vand.u32 2147483647, %v510_v62  ;;  %vm516_vm12 = vweird.f32 %v510_v62 }
 0x2b6   : > { %v357_v1 = vsub.f32 1.0, %v356_v60  ;;  %679 = vmatmul.msk.f32.vlgmr.msra.gmra.mxu2 %vm242_vm1, %v291_v63  ;;  %v437_v19 = vadd.f32 %v778_v58, %v436_v13 }
 0x2b7   : > { %391 = vmatpush.msrb.mxu2 %v371_v45  ;;  %v523_v22 = vor.u32 1.1754944e-38, %v522_v16  ;;  %vm521_vm15 = vcmp.eq.f32.partialorder %v520_v18, 8.507059e+37 }
 0x2b8   : > { %v358_v3 = vmul.f32 %v780_v59, %v357_v1  ;;  %v441_v27 = vsel %vm440_vm2, %v778_v58, %v437_v19 }
 0x2b9   : > { %v446_v29 = vsel %vm443_vm3, %v445_v28, %v441_v27 }
 0x2ba   : > { %v359_v6 = vadd.f32 %v780_v59, %v358_v3  ;;  %v447_v31 = vmul.f32 %v1082_v35, %v446_v29 }
 0x2bb   : > { %v782_v7 = vpop.eup %781  ;;  %v527_v9 = vpop.permute.xlu0 %526 }
 0x2bc   : > { %v512_v10 = vmul.f32 %v782_v7, %v510_v62  ;;  %547 = vmatpush.msra.mxu2 %v527_v9  ;;  %v363_v11 = vsel %vm362_vm8, %v780_v59, %v359_v6  ;;  %vm517_vm10 = vweird.f32 %v782_v7 }
 0x2bd   : > { %v368_v12 = vsel %vm365_vm9, %v367_v8, %v363_v11  ;;  %vm518_vm13 = vmor %vm516_vm12, %vm517_vm10 }
 0x2be   : > { %v513_v14 = vsub.f32 1.0, %v512_v10  ;;  %v369_v15 = vmul.f32 %v1086_v39, %v368_v12 }
 0x2c0   : > { %v514_v17 = vmul.f32 %v782_v7, %v513_v14  ;;  %682 = vmatmul.msk.f32.vlgmr.msrb.gmra.mxu2 %vm242_vm1, %v369_v15 }
 0x2c2   : > { %v515_v20 = vadd.f32 %v782_v7, %v514_v17 }
 0x2c4   : > { %v519_v24 = vsel %vm518_vm13, %v782_v7, %v515_v20 }
 0x2c5   : > { %v524_v25 = vsel %vm521_vm15, %v523_v22, %v519_v24 }
 0x2c6   : > { %v525_v26 = vmul.f32 %v1090_v42, %v524_v25 }
 0x2c8   : > { %688 = vmatmul.msk.f32.vlgmr.msra.gmra.mxu2 %vm242_vm1, %v525_v26 }
 0x2cc   : > { %v449_v30 = vpop.permute.xlu1 %448 }
 0x2cd   : > { %469 = vmatpush.msrb.mxu3 %v449_v30 }
 0x2ce   : > { %685 = vmatmul.msk.f32.vlgmr.msrb.gmra.mxu3 %vm242_vm1, %v447_v31 }
 0x339   : > { %v315_v32 = vpop.f32.mrf.mxu2 }
 0x343   : > { %v393_v33 = vpop.f32.mrf.mxu2 }
 0x344   : > { %553 = vrot.lane.b32.xlu2 %v393_v33, %s929_s8 }
 0x34b   : > { %v549_v34 = vpop.f32.mrf.mxu2 }
 0x34c   : > { %561 = vrot.lane.b32.xlu0 %v549_v34, %s930_s10 }
 0x351   : > { %v471_v36 = vpop.f32.mrf.mxu3 }
 0x352   : > { %557 = vrot.lane.b32.xlu1 %v471_v36, %s931_s11 }
 0x39e   : > { %v554_v35 = vpop.permute.xlu2 %553 }
 0x39f   : > { %v564_v37 = vsel %vm242_vm1, %v315_v32, %v554_v35 }
 0x3be   : > { %v562_v39 = vpop.permute.xlu0 %561 }
 0x3c4   : > { %v558_v38 = vpop.permute.xlu1 %557 }
 0x3c5   : > { %v566_v40 = vsel %vm565_vm4, %v564_v37, %v558_v38 }
 0x3c6   : > { %v568_v41 = vsel %vm567_vm5, %v566_v40, %v562_v39 }
 0x3c7   : > { %569 = vst.msk [vmem:[%s204_s18] sm:$0xff] %vm214_vm0, %v568_v41 }
 0x3c8   : > { %870 = shalt.err (!%p867_p9)
}
 0x3c9   : > { %699 = dma.vmem_to_hbm [thread:$0]  (%p1012_p13), %s584_s21, 128, %s586_s22, %s571_s19  }
 0x3ca PF: > { %s597_s5 = sand.u32 1, %s901_s12   ;;  %p1157_p10 = scmp.ge.s32.totalorder %s913_s15, 2 }
 0x3cb   : > { %s598_s8 = scalar_lea.sflag [#allocation4], %s597_s5 }
 0x3cc   : > { %p710_p11 = pnand %p1157_p10, %p1017_p4 }
 0x3ce   : > { %p711_p0 = pneg %p710_p11 }
 0x3d0   : > { %896 = dma.done.wait (%p711_p0), %s598_s8, 128  }
 0x3d1   : > { %898 = vsyncadd (%p711_p0), %s598_s8, 4294967168  ;;  %p17_p2 = scmp.ge.s32.totalorder %s992_s26, 4   ;;  %s1158_s12 = smov %s905_s13 }
 0x3d2   : > { %s1159_s13 = smov %s909_s14  ;;  %s1160_s14 = smov %s1004_s29 }
 0x3d3   : > { %s1161_s15 = smov %s992_s26  ;;  %19 = sbr.rel (!%p17_p2) target bundleno = 6 (0x6), region = 81 }
 0x3d8   :  { %604 = vsyncpa [#allocation3], 1 }
 0x3d9   :  { %606 = vsyncpa [#allocation3 + $0x1], 1 }
 0x3da   :  { %607 = vsyncpa [#allocation6], 1 }
 0x3db   :  { %608 = vsyncpa [#allocation4], 1 }
 0x3dc   :  { %610 = vsyncpa [#allocation4 + $0x1], 1 }

</bundles_post_ra>
